<compile_context>
chip_gen: v6e
topology: v6e:2x2x1
jax: 0.10.0
libtpu: 0.0.40
codegen_flags: <defaults>
</compile_context>

<pallas_src>
import jax
import jax.numpy as jnp
from jax.experimental import pallas as pl
from jax.experimental.pallas import tpu as pltpu


def detective_kernel(x_ref, w1_ref, b1_ref, w2_ref, b2_ref, w3_ref, b3_ref, o_ref):
    x = x_ref[...].astype(jnp.bfloat16)                     # (TILE_B, size)

    # Layer 1: size -> 256 (bf16 MXU operands, f32 accumulate), ReLU in f32.
    h1 = jnp.dot(x, w1_ref[...], preferred_element_type=jnp.float32) + b1_ref[...]
    h1 = jnp.maximum(h1, 0.0)
    # Dropout(0.4): identity in inference mode.

    # Layer 2: 256 -> 128.
    h2 = jnp.dot(h1.astype(jnp.bfloat16), w2_ref[...],
                 preferred_element_type=jnp.float32) + b2_ref[...]
    h2 = jnp.maximum(h2, 0.0)
    # Dropout(0.4): identity in inference mode.

    # Layer 3: 128 -> size (output stored at native width; no zero-pad columns).
    out = jnp.dot(h2.astype(jnp.bfloat16), w3_ref[...],
                  preferred_element_type=jnp.float32) + b3_ref[...]
    o_ref[...] = out.astype(o_ref.dtype)


def _round_up(a, m):
    return ((a + m - 1) // m) * m


def _select_tile_b(B, tile_b_max):
    """Pick a batch tile: big tiles for bandwidth, >=2 grid steps for v7x megacore."""
    if B <= 8:
        return B                                   # single exact block (equals full array dim)
    if B <= 2 * tile_b_max:
        # Split into ~2 tiles so the "parallel" batch axis shards across 2 TensorCores on v7x.
        return min(_round_up(pl.cdiv(B, 2), 8), tile_b_max)
    return tile_b_max


def detective_forward(cipher, params, *, tile_b_max=1024, out_dtype=jnp.float32):
    """Pallas-backed forward pass of the Detective MLP (inference mode)."""
    w1, b1, w2, b2, w3, b3 = params
    B, size = cipher.shape
    h1_dim = w1.shape[1]
    h2_dim = w2.shape[1]
    out_dim = w3.shape[1]
    assert out_dim == size, "final layer must map back to `size`"

    tile_b = _select_tile_b(B, tile_b_max)
    grid_b = pl.cdiv(B, tile_b)                    # ragged last block is masked by Pallas

    cost = pl.CostEstimate(
        flops=2 * B * (size * h1_dim + h1_dim * h2_dim + h2_dim * out_dim),
        transcendentals=0,
        bytes_accessed=(cipher.size * cipher.dtype.itemsize
                        + (w1.size + w2.size + w3.size) * 2
                        + (b1.size + b2.size + b3.size) * 4
                        + B * out_dim * jnp.dtype(out_dtype).itemsize),
    )

    out = pl.pallas_call(
        detective_kernel,
        out_shape=jax.ShapeDtypeStruct((B, out_dim), out_dtype),
        grid_spec=pltpu.PrefetchScalarGridSpec(
            num_scalar_prefetch=0,
            grid=(grid_b,),
            in_specs=[
                pl.BlockSpec((tile_b, size), lambda i: (i, 0)),   # x: tiled over batch
                # Weights/biases: constant index_maps -> fetched once, stay VMEM-resident
                # (~100 KB total; default double-buffering left as-is, it is negligible).
                pl.BlockSpec(w1.shape, lambda i: (0, 0)),
                pl.BlockSpec(b1.shape, lambda i: (0, 0)),
                pl.BlockSpec(w2.shape, lambda i: (0, 0)),
                pl.BlockSpec(b2.shape, lambda i: (0, 0)),
                pl.BlockSpec(w3.shape, lambda i: (0, 0)),
                pl.BlockSpec(b3.shape, lambda i: (0, 0)),
            ],
            out_specs=pl.BlockSpec((tile_b, out_dim), lambda i: (i, 0)),
        ),
        compiler_params=pltpu.CompilerParams(
            dimension_semantics=("parallel",),          # shard batch tiles across TCs on v7x
            vmem_limit_bytes=32 * 1024 * 1024,          # explicit: covers v5e's 16 MiB default
        ),
        cost_estimate=cost,
    )(cipher, w1, b1, w2, b2, w3, b3)

    return out


def init_params(size=64, seed=0):
    """Deterministic init mimicking nn.Linear (uniform +/- 1/sqrt(fan_in)).

    Weights stored as (in, out) (transpose of PyTorch's (out, in)), cast to bf16 for the MXU
    (results differ from an fp32 PyTorch Detective only by bf16 rounding). Biases (1, out) f32.
    """
    key = jax.random.PRNGKey(seed)
    dims = [(size, 256), (256, 128), (128, size)]
    params = []
    for fan_in, fan_out in dims:
        key, kw, kb = jax.random.split(key, 3)
        bound = 1.0 / jnp.sqrt(fan_in)
        w = jax.random.uniform(kw, (fan_in, fan_out), jnp.float32, -bound, bound)
        b = jax.random.uniform(kb, (1, fan_out), jnp.float32, -bound, bound)
        params += [w.astype(jnp.bfloat16), b]
    return tuple(params)


def reference_forward(cipher, params):
    """Pure-JAX reference with the same bf16-operand / f32-accumulate math."""
    w1, b1, w2, b2, w3, b3 = params
    h1 = jax.nn.relu(jnp.dot(cipher.astype(jnp.bfloat16), w1,
                             preferred_element_type=jnp.float32) + b1)
    h2 = jax.nn.relu(jnp.dot(h1.astype(jnp.bfloat16), w2,
                             preferred_element_type=jnp.float32) + b2)
    return jnp.dot(h2.astype(jnp.bfloat16), w3,
                   preferred_element_type=jnp.float32) + b3


if __name__ == "__main__":
    size = 64
    params = init_params(size=size, seed=0)
    key = jax.random.PRNGKey(0)

    # Small case (single exact block).
    batch = 2
    cipher = jax.random.normal(key, (batch, size), jnp.float32)
    out = jax.block_until_ready(detective_forward(cipher, params))
    ref = reference_forward(cipher, params)
    assert out.shape == (batch, size)
    assert jnp.allclose(out, ref, atol=1e-2, rtol=1e-2), "mismatch vs JAX reference (small batch)"

    # Ragged multi-block case (grid > 1, masked last block) to exercise the cdiv grid path.
    batch2 = 100
    cipher2 = jax.random.normal(jax.random.PRNGKey(1), (batch2, size), jnp.float32)
    out2 = jax.block_until_ready(detective_forward(cipher2, params))
    ref2 = reference_forward(cipher2, params)
    assert out2.shape == (batch2, size)
    assert jnp.allclose(out2, ref2, atol=1e-2, rtol=1e-2), "mismatch vs JAX reference (ragged grid)"

    print("KERNEL_OK")
</pallas_src>

<mosaic_0001>
module attributes {stable_mosaic.version = 11 : i64} {
  func.func @detective_kernel(%arg0: i32, %arg1: memref<2x64xf32, #tpu.memory_space<vmem>>, %arg2: memref<64x256xbf16, #tpu.memory_space<vmem>>, %arg3: memref<1x256xf32, #tpu.memory_space<vmem>>, %arg4: memref<256x128xbf16, #tpu.memory_space<vmem>>, %arg5: memref<1x128xf32, #tpu.memory_space<vmem>>, %arg6: memref<128x64xbf16, #tpu.memory_space<vmem>>, %arg7: memref<1x64xf32, #tpu.memory_space<vmem>>, %arg8: memref<2x64xf32, #tpu.memory_space<vmem>>) attributes {dimension_semantics = [#tpu.dimension_semantics<parallel>], iteration_bounds = array<i64: 1>, scalar_prefetch = 0 : i64, scratch_operands = 0 : i64, tpu.core_type = #tpu.core_type<tc>, window_params = [{transform_indices = @transform_0, window_bounds = array<i64: 2, 64>}, {pipeline_mode = #tpu.pipeline_mode<synchronous>, transform_indices = @transform_1, window_bounds = array<i64: 64, 256>}, {pipeline_mode = #tpu.pipeline_mode<synchronous>, transform_indices = @transform_2, window_bounds = array<i64: 1, 256>}, {pipeline_mode = #tpu.pipeline_mode<synchronous>, transform_indices = @transform_3, window_bounds = array<i64: 256, 128>}, {pipeline_mode = #tpu.pipeline_mode<synchronous>, transform_indices = @transform_4, window_bounds = array<i64: 1, 128>}, {pipeline_mode = #tpu.pipeline_mode<synchronous>, transform_indices = @transform_5, window_bounds = array<i64: 128, 64>}, {pipeline_mode = #tpu.pipeline_mode<synchronous>, transform_indices = @transform_6, window_bounds = array<i64: 1, 64>}, {transform_indices = @transform_7, window_bounds = array<i64: 2, 64>}]} {
    %c0 = arith.constant 0 : index
    %c0_0 = arith.constant 0 : index
    %0 = vector.load %arg1[%c0, %c0_0] : memref<2x64xf32, #tpu.memory_space<vmem>>, vector<2x64xf32>
    %1 = arith.truncf %0 : vector<2x64xf32> to vector<2x64xbf16>
    %c0_1 = arith.constant 0 : index
    %c0_2 = arith.constant 0 : index
    %2 = vector.load %arg2[%c0_1, %c0_2] : memref<64x256xbf16, #tpu.memory_space<vmem>>, vector<64x256xbf16>
    %cst = arith.constant dense<0.000000e+00> : vector<2x256xf32>
    %3 = tpu.matmul %1, %2, %cst {dimension_numbers = #tpu.dot_dimension_numbers<[1], [0], [0], [1], [0, 0, 1, 1], [], []>} : vector<2x64xbf16>, vector<64x256xbf16>, vector<2x256xf32> -> vector<2x256xf32>
    %c0_3 = arith.constant 0 : index
    %c0_4 = arith.constant 0 : index
    %4 = vector.load %arg3[%c0_3, %c0_4] : memref<1x256xf32, #tpu.memory_space<vmem>>, vector<1x256xf32>
    %5 = vector.broadcast %4 : vector<1x256xf32> to vector<2x256xf32>
    %6 = arith.addf %3, %5 : vector<2x256xf32>
    %cst_5 = arith.constant 0.000000e+00 : f32
    %7 = vector.broadcast %cst_5 : f32 to vector<2x256xf32>
    %8 = arith.maximumf %6, %7 : vector<2x256xf32>
    %9 = arith.truncf %8 : vector<2x256xf32> to vector<2x256xbf16>
    %c0_6 = arith.constant 0 : index
    %c0_7 = arith.constant 0 : index
    %10 = vector.load %arg4[%c0_6, %c0_7] : memref<256x128xbf16, #tpu.memory_space<vmem>>, vector<256x128xbf16>
    %cst_8 = arith.constant dense<0.000000e+00> : vector<2x128xf32>
    %11 = tpu.matmul %9, %10, %cst_8 {dimension_numbers = #tpu.dot_dimension_numbers<[1], [0], [0], [1], [0, 0, 1, 1], [], []>} : vector<2x256xbf16>, vector<256x128xbf16>, vector<2x128xf32> -> vector<2x128xf32>
    %c0_9 = arith.constant 0 : index
    %c0_10 = arith.constant 0 : index
    %12 = vector.load %arg5[%c0_9, %c0_10] : memref<1x128xf32, #tpu.memory_space<vmem>>, vector<1x128xf32>
    %13 = vector.broadcast %12 : vector<1x128xf32> to vector<2x128xf32>
    %14 = arith.addf %11, %13 : vector<2x128xf32>
    %cst_11 = arith.constant 0.000000e+00 : f32
    %15 = vector.broadcast %cst_11 : f32 to vector<2x128xf32>
    %16 = arith.maximumf %14, %15 : vector<2x128xf32>
    %17 = arith.truncf %16 : vector<2x128xf32> to vector<2x128xbf16>
    %c0_12 = arith.constant 0 : index
    %c0_13 = arith.constant 0 : index
    %18 = vector.load %arg6[%c0_12, %c0_13] : memref<128x64xbf16, #tpu.memory_space<vmem>>, vector<128x64xbf16>
    %cst_14 = arith.constant dense<0.000000e+00> : vector<2x64xf32>
    %19 = tpu.matmul %17, %18, %cst_14 {dimension_numbers = #tpu.dot_dimension_numbers<[1], [0], [0], [1], [0, 0, 1, 1], [], []>} : vector<2x128xbf16>, vector<128x64xbf16>, vector<2x64xf32> -> vector<2x64xf32>
    %c0_15 = arith.constant 0 : index
    %c0_16 = arith.constant 0 : index
    %20 = vector.load %arg7[%c0_15, %c0_16] : memref<1x64xf32, #tpu.memory_space<vmem>>, vector<1x64xf32>
    %21 = vector.broadcast %20 : vector<1x64xf32> to vector<2x64xf32>
    %22 = arith.addf %19, %21 : vector<2x64xf32>
    %c0_17 = arith.constant 0 : index
    %c0_18 = arith.constant 0 : index
    %23 = vector.load %arg8[%c0_17, %c0_18] : memref<2x64xf32, #tpu.memory_space<vmem>>, vector<2x64xf32>
    tpu.vector_store %arg8[%c0_17, %c0_18], %22 {strides = array<i32>} : memref<2x64xf32, #tpu.memory_space<vmem>>, vector<2x64xf32>,
    return
  }
  func.func @transform_0(%arg0: i32) -> (i32, i32) {
    %c0_i32 = arith.constant 0 : i32
    %c0_i32_0 = arith.constant 0 : i32
    return %arg0, %c0_i32 : i32, i32
  }
  func.func @transform_1(%arg0: i32) -> (i32, i32) {
    %c0_i32 = arith.constant 0 : i32
    %c0_i32_0 = arith.constant 0 : i32
    %c0_i32_1 = arith.constant 0 : i32
    return %c0_i32, %c0_i32_0 : i32, i32
  }
  func.func @transform_2(%arg0: i32) -> (i32, i32) {
    %c0_i32 = arith.constant 0 : i32
    %c0_i32_0 = arith.constant 0 : i32
    %c0_i32_1 = arith.constant 0 : i32
    return %c0_i32, %c0_i32_0 : i32, i32
  }
  func.func @transform_3(%arg0: i32) -> (i32, i32) {
    %c0_i32 = arith.constant 0 : i32
    %c0_i32_0 = arith.constant 0 : i32
    %c0_i32_1 = arith.constant 0 : i32
    return %c0_i32, %c0_i32_0 : i32, i32
  }
  func.func @transform_4(%arg0: i32) -> (i32, i32) {
    %c0_i32 = arith.constant 0 : i32
    %c0_i32_0 = arith.constant 0 : i32
    %c0_i32_1 = arith.constant 0 : i32
    return %c0_i32, %c0_i32_0 : i32, i32
  }
  func.func @transform_5(%arg0: i32) -> (i32, i32) {
    %c0_i32 = arith.constant 0 : i32
    %c0_i32_0 = arith.constant 0 : i32
    %c0_i32_1 = arith.constant 0 : i32
    return %c0_i32, %c0_i32_0 : i32, i32
  }
  func.func @transform_6(%arg0: i32) -> (i32, i32) {
    %c0_i32 = arith.constant 0 : i32
    %c0_i32_0 = arith.constant 0 : i32
    %c0_i32_1 = arith.constant 0 : i32
    return %c0_i32, %c0_i32_0 : i32, i32
  }
  func.func @transform_7(%arg0: i32) -> (i32, i32) {
    %c0_i32 = arith.constant 0 : i32
    %c0_i32_0 = arith.constant 0 : i32
    return %arg0, %c0_i32 : i32, i32
  }
}

</mosaic_0001>

<bundles_post_ra>
// kernel: tpu_custom_call.1
= control target key start
LH: loop header
LB: loop body
LE: loop exit
PB: predicated region body
PF: predicated region fallthrough
CT: control target
= control target key end

     0   :  { %12 = vsyncpa [#allocation3], 0  ;;  %s744_s0 = inlined_call_operand.vmem [shape: f32[2,64], index: 0, kind: input, shape index: {}]   ;;  %s745_s1 = inlined_call_operand.vmem [shape: bf16[64,256], index: 1, kind: input, shape index: {}]   ;;  %s746_s2 = inlined_call_operand.vmem [shape: f32[1,256], index: 2, kind: input, shape index: {}]   ;;  %s747_s3 = inlined_call_operand.hbm [shape: bf16[256,128], index: 3, kind: input, shape index: {}]   ;;  %s748_s4 = inlined_call_operand.vmem [shape: f32[1,128], index: 4, kind: input, shape index: {}]   ;;  %s749_s5 = inlined_call_operand.vmem [shape: bf16[128,64], index: 5, kind: input, shape index: {}]   ;;  %s750_s6 = inlined_call_operand.vmem [shape: f32[1,64], index: 6, kind: input, shape index: {}]   ;;  %s751_s7 = inlined_call_operand.hbm [shape: f32[2,64], index: 7, kind: output, shape index: {}]  }
   0x1   :  { %13 = vsyncpa [#allocation4], 0  ;;  %s631_s24 = smov [#allocation2]  }
   0x2   :  { %s25_s25 = sshll.u32 %s631_s24, 4  ;;  %s26_s25 = int_to_ptr.vmem [resolvable:$true] %s25_s25 }
   0x3   :  { %s595_s26 = scalar_lea.vmem %s26_s25, 2048  ;;  %p600_p1 = scmp.lt.s32.totalorder %s26_s25, %s26_s25 }
   0x4   :  { %p596_p0 = scmp.ne.s32.totalorder %s26_s25, %s595_s26  ;;  %p601_p2 = scmp.lt.s32.totalorder %s595_s26, %s595_s26 }
   0x6   :  { %p602_p3 = por %p601_p2, %p600_p1 }
   0x8   :  { %p603_p4 = pnand %p602_p3, %p596_p0 }
   0xa   :  { %606 = shalt.err (!%p603_p4)
}
   0xb   :  { %s632_s27 = smov 64   ;;  %s633_s28 = smov 4  }
   0xc   :  { %31 = dma.hbm_to_vmem [thread:$0]  %s747_s3, 2048, %s26_s25, [#allocation3], %s632_s27, %s632_s27, %s633_s28  }
   0xd   :  { %627 = dma.done.wait [#allocation3], 2048  }
   0xe   :  { %628 = vsyncadd [#allocation3], 4294965248  ;;  %v634_v0 = vmov 0   ;;  %v551_v1 = vld [vmem:[%s745_s1 + $0x34] ss:$8 sps:$4 sm:$0xff]   ;;  %v567_v13 = vld [vmem:[#allocation2 + $0x68] sm:$0xff]   ;;  %v54_v33 = vlaneseq }
   0xf   :  { %140 = vmatprep.mubr.bf16.mxu0 %v634_v0  ;;  %v553_v2 = vld [vmem:[%s745_s1 + $0x30] ss:$8 sps:$4 sm:$0xff]   ;;  %116 = vmatprep.subr.bf16.mxu0 %v551_v1  ;;  %v554_v3 = vld [vmem:[%s745_s1 + $0x24] ss:$8 sps:$4 sm:$0xff]   ;;  %v556_v4 = vld [vmem:[%s745_s1 + $0x20] ss:$8 sps:$4 sm:$0xff]  }
  0x10   :  { %117 = vmatpush1.bf16.msra.mxu0 %v553_v2  ;;  %v557_v5 = vld [vmem:[%s745_s1 + $0x14] ss:$8 sps:$4 sm:$0xff]   ;;  %v559_v6 = vld [vmem:[%s745_s1 + $0x10] ss:$8 sps:$4 sm:$0xff]   ;;  %v560_v7 = vld [vmem:[%s745_s1 + $0x4] ss:$8 sps:$4 sm:$0xff]  }
  0x11   :  { %118 = vmatprep.subr.bf16.mxu0 %v554_v3  ;;  %v563_v8 = vld [vmem:[#allocation2 + $0x78] sm:$0xff]   ;;  %v565_v10 = vld [vmem:[#allocation2 + $0x70] sm:$0xff]   ;;  %v562_v11 = vld [vmem:[%s745_s1] ss:$8 sps:$4 sm:$0xff]   ;;  %vm104_vm0 = vcmask 523264   ;;  %v635_v28 = vmov 0.0  }
  0x12   :  { %v564_v9 = vld [vmem:[#allocation2 + $0x38] sm:$0xff]   ;;  %493 = vmatprep.subr.bf16.mxu1 %v563_v8  ;;  %v566_v12 = vld [vmem:[#allocation2 + $0x30] sm:$0xff]   ;;  %v42_v14 = vld [vmem:[%s744_s0] sm:$0x3]  ;;  %v55_v34 = vshrl.u32 %v54_v33, 7  ;;  %vm636_vm1 = vmmov 0  }
  0x13   :  { %494 = vmatpush3.bf16.msra.mxu1 %v564_v9  ;;  %v568_v15 = vld [vmem:[#allocation2 + $0x28] sm:$0xff]   ;;  %v43_v16 = vpack.c.bf16 %v42_v14, %v42_v14  ;;  %v569_v17 = vld [vmem:[#allocation2 + $0x60] sm:$0xff]   ;;  %v571_v19 = vld [vmem:[#allocation2 + $0x58] sm:$0xff]   ;;  %vm441_vm2 = vcmask 517120  }
  0x14   :  { %119 = vmatpush1.bf16.msra.mxu0 %v556_v4  ;;  %495 = vmatprep.subr.bf16.mxu1 %v565_v10  ;;  %v570_v18 = vld [vmem:[#allocation2 + $0x20] sm:$0xff]   ;;  %v572_v20 = vld [vmem:[#allocation2 + $0x18] sm:$0xff]   ;;  %v573_v21 = vld [vmem:[#allocation2 + $0x50] sm:$0xff]   ;;  %v56_v35 = vsub.s32 0, %v55_v34  ;;  %v60_v37 = vsub.s32 1, %v55_v34 }
  0x15   :  { %120 = vmatprep.subr.bf16.mxu0 %v557_v5  ;;  %v574_v22 = vld [vmem:[#allocation2 + $0x10] sm:$0xff]   ;;  %v575_v23 = vld [vmem:[#allocation2 + $0x48] sm:$0xff]   ;;  %v577_v25 = vld [vmem:[#allocation2 + $0x40] sm:$0xff]  }
  0x16   :  { %v576_v24 = vld [vmem:[#allocation2 + $0x8] sm:$0xff]   ;;  %v578_v26 = vld [vmem:[#allocation2] sm:$0xff]   ;;  %v579_v27 = vld [vmem:[%s749_s5 + $0x38] sm:$0xff]  }
  0x17   :  { %496 = vmatpush3.bf16.msra.mxu1 %v566_v12  ;;  %v580_v29 = vld [vmem:[%s749_s5 + $0x30] sm:$0xff]   ;;  %v581_v30 = vld [vmem:[%s749_s5 + $0x28] sm:$0xff]   ;;  %v582_v31 = vld [vmem:[%s749_s5 + $0x20] sm:$0xff]  }
  0x18   :  { %121 = vmatpush1.bf16.msra.mxu0 %v559_v6  ;;  %497 = vmatprep.subr.bf16.mxu1 %v567_v13  ;;  %v583_v32 = vld [vmem:[%s749_s5 + $0x18] sm:$0xff]   ;;  %v52_v36 = vld [vmem:[%s746_s2] sm:$0x3]  ;;  %v584_v50 = vld [vmem:[%s749_s5 + $0x10] sm:$0xff]  }
  0x19   :  { %122 = vmatprep.subr.bf16.mxu0 %v560_v7  ;;  %v57_v38 = vrot.slane %v52_v36, %v56_v35  ;;  %v61_v39 = vrot.slane %v52_v36, %v60_v37  ;;  %v585_v51 = vld [vmem:[%s749_s5 + $0x8] sm:$0xff]   ;;  %v586_v52 = vld [vmem:[%s749_s5] sm:$0xff]   ;;  %s637_s5 = smov [#allocation5]  }
  0x1a   :  { %v467_v54 = vld [vmem:[%s748_s4] ss:$0 sm:$0xff]  ;;  %s449_s20 = sshll.u32 %s637_s5, 4  ;;  %s450_s20 = int_to_ptr.vmem [resolvable:$true] %s449_s20 }
  0x1b   :  { %498 = vmatpush3.bf16.msra.mxu1 %v568_v15  ;;  %v484_v62 = vld [vmem:[%s750_s6] ss:$0 sm:$0xff]  ;;  %s607_s4 = scalar_lea.vmem %s450_s20, 32  ;;  %p612_p6 = scmp.lt.s32.totalorder %s450_s20, %s450_s20 }
  0x1c   :  { %123 = vmatpush1.bf16.msra.mxu0 %v562_v11  ;;  %499 = vmatprep.subr.bf16.mxu1 %v569_v17  ;;  %p608_p5 = scmp.ne.s32.totalorder %s450_s20, %s607_s4  ;;  %p613_p7 = scmp.lt.s32.totalorder %s607_s4, %s607_s4 }
  0x1d   :  { %524 = vmatprep.subr.bf16.mxu0 %v635_v28 }
  0x1e   :  { %p614_p8 = por %p613_p7, %p612_p6 }
  0x1f   :  { %466 = vmatmul.mubr.msk.bf16.vlgmr.msra.gmra.mxu0 %vm104_vm0, %v43_v16  ;;  %500 = vmatpush3.bf16.msra.mxu1 %v570_v18 }
  0x20   :  { %501 = vmatprep.subr.bf16.mxu1 %v571_v19  ;;  %525 = vmatpush3.bf16.msra.mxu0 %v579_v27  ;;  %p615_p9 = pnand %p614_p8, %p608_p5 }
  0x21   :  { %526 = vmatprep.subr.bf16.mxu0 %v635_v28  ;;  %540 = vmatprep.mubr.msk.bf16.mxu0 %vm636_vm1, %v635_v28 }
  0x23   :  { %502 = vmatpush3.bf16.msra.mxu1 %v572_v20 }
  0x24   :  { %503 = vmatprep.subr.bf16.mxu1 %v573_v21  ;;  %527 = vmatpush3.bf16.msra.mxu0 %v580_v29 }
  0x25   :  { %528 = vmatprep.subr.bf16.mxu0 %v635_v28 }
  0x27   :  { %504 = vmatpush3.bf16.msra.mxu1 %v574_v22 }
  0x28   :  { %505 = vmatprep.subr.bf16.mxu1 %v575_v23  ;;  %529 = vmatpush3.bf16.msra.mxu0 %v581_v30 }
  0x29   :  { %530 = vmatprep.subr.bf16.mxu0 %v635_v28 }
  0x2b   :  { %506 = vmatpush3.bf16.msra.mxu1 %v576_v24 }
  0x2c   :  { %507 = vmatprep.subr.bf16.mxu1 %v577_v25  ;;  %531 = vmatpush3.bf16.msra.mxu0 %v582_v31 }
  0x2d   :  { %532 = vmatprep.subr.bf16.mxu0 %v635_v28 }
  0x2f   :  { %508 = vmatpush3.bf16.msra.mxu1 %v578_v26 }
  0x30   :  { %533 = vmatpush3.bf16.msra.mxu0 %v583_v32 }
  0x31   :  { %534 = vmatprep.subr.bf16.mxu0 %v635_v28 }
  0x34   :  { %535 = vmatpush3.bf16.msra.mxu0 %v584_v50 }
  0x35   :  { %536 = vmatprep.subr.bf16.mxu0 %v635_v28 }
  0x38   :  { %537 = vmatpush3.bf16.msra.mxu0 %v585_v51 }
  0x39   :  { %538 = vmatprep.subr.bf16.mxu0 %v635_v28 }
  0x3c   :  { %539 = vmatpush3.bf16.msra.mxu0 %v586_v52 }
  0xdf   :  { %v142_v40 = vpop.f32.mrf.mxu0 }
  0xe0   :  { %v143_v41 = vadd.f32 %v142_v40, %v57_v38 }
  0xe1   :  { %v144_v42 = vpop.f32.mrf.mxu0 }
  0xe2   :  { %v145_v43 = vadd.f32 %v144_v42, %v61_v39  ;;  %v149_v44 = vmax.f32 %v143_v41, 0.0 }
  0xe3   :  { %v146_v45 = vpop.f32.mrf.mxu0 }
  0xe4   :  { %v150_v46 = vmax.f32 %v145_v43, 0.0  ;;  %v151_v49 = vpack.c.bf16 %v149_v44, %v149_v44 }
  0xe5   :  { %v147_v47 = vpop.f32.mrf.mxu0 }
  0xe6   :  { %v152_v48 = vpack.c.bf16 %v150_v46, %v150_v46 }
  0xe8   :  { %320 = vmatprep.mubr.bf16.mxu1 %v152_v48 }
  0xe9   :  { %321 = vmatmul.mubr.bf16.vlgmr.msra.gmra.mxu1 %v151_v49 }
 0x1a9   :  { %v509_v53 = vpop.f32.mrf.mxu1 }
 0x1ab   :  { %v510_v55 = vpop.f32.mrf.mxu1 }
 0x1ac   :  { %v511_v56 = vadd.f32 %v510_v55, %v509_v53 }
 0x1ad   :  { %v512_v57 = vpop.f32.mrf.mxu1 }
 0x1ae   :  { %v323_v58 = vadd.f32 %v511_v56, %v467_v54 }
 0x1af   :  { %v513_v59 = vpop.f32.mrf.mxu1 }
 0x1b0   :  { %v328_v60 = vmax.f32 %v323_v58, 0.0 }
 0x1b2   :  { %v329_v61 = vpack.c.bf16 %v328_v60, %v328_v60 }
 0x1b4   :  { %541 = vmatmul.mubr.bf16.vlgmr.msra.gmra.mxu0 %v329_v61 }
 0x274   :  { %v435_v63 = vpop.f32.mrf.mxu0 }
 0x275   :  { %v436_v0 = vadd.f32 %v484_v62, %v435_v63 }
 0x276   :  { %v542_v1 = vpop.f32.mrf.mxu0 }
 0x277   :  { %442 = vst.msk [vmem:[#allocation5] sm:$0x3] %vm441_vm2, %v436_v0 }
 0x278   :  { %v438_v2 = vpop.f32.mrf.mxu0 }
 0x279   :  { %618 = shalt.err (!%p615_p9)
}
 0x27a   :  { %452 = dma.vmem_to_hbm [thread:$0]  %s450_s20, 32, %s751_s7, [#allocation4]   ;;  %v543_v3 = vpop.f32.mrf.mxu0 }
 0x27b   :  { %629 = dma.done.wait [#allocation4], 32  }
 0x27c   :  { %630 = vsyncadd [#allocation4], 4294967264 }
 0x27d   :  { %456 = vsyncpa [#allocation3], 1 }
 0x27e   :  { %457 = vsyncpa [#allocation4], 1 }

</bundles_post_ra>
